<compile_context>
chip_gen: v5e
topology: v5e:2x2
jax: 0.10.0
libtpu: 0.0.40
codegen_flags: <defaults>
</compile_context>

<pallas_src>
import jax
import jax.numpy as jnp
from jax.experimental import pallas as pl
from jax.experimental.pallas import tpu as pltpu

# ---------------- model hyperparameters (small, consistent with the module) --------------
BATCH = 4
WINDOW = 8                      # window_size  (sequence length)
FEATURE = 4                     # input_feature
HIDDEN = 32                     # hidden_size
HALF = (HIDDEN * WINDOW) // 2   # 128  (linear1 output width)
TARGET = 1                      # target_size
BPAD = 8                        # batch padded to one vreg sublane group


def lstm_mlp_kernel(x_ref, small_ref, big_ref, out_ref, hstash_ref):
    """Whole forward pass in one kernel invocation (everything lives in VMEM / vregs).

    x_ref      : (WINDOW*BPAD, FEATURE)   time-major input, batch padded to 8 sublanes
    small_ref  : (FEATURE+4, 4*HIDDEN)    packed small params:
                   rows 0:F   Wih^T   (g-gate columns pre-doubled)
                   row  F     bias_ih + bias_hh (g lanes pre-doubled)
                   row  F+1   b1
                   row  F+2   w2 (linear2 weight as a row)
                   row  F+3   b2 (broadcast across lanes)
    big_ref    : (HIDDEN + WINDOW*HIDDEN, 128)  [Whh^T (g cols pre-doubled) ; w1^T]
    out_ref    : (BATCH, TARGET)
    hstash_ref : (BPAD, WINDOW*HIDDEN)    VMEM scratch holding every h_t for the epilogue
    """
    G = small_ref.shape[1]            # 4H
    H = G // 4
    BP = hstash_ref.shape[0]
    WH = hstash_ref.shape[1]          # W*H
    W = WH // H
    F = x_ref.shape[1]

    # ---------------- prologue (off the serial recurrence chain) ----------------
    wih_t = small_ref[0:F, :]                                   # (F, 4H)
    bias = small_ref[F:F + 1, :]                                # (1, 4H)
    b1 = small_ref[F + 1:F + 2, :]                              # (1, HALF)
    w2 = small_ref[F + 2:F + 3, :]                              # (1, HALF)
    b2 = small_ref[F + 3:F + 4, 0:1]                            # (1, 1)

    # Hoisted non-recurrent projection for all timesteps: one (W*BP, F) @ (F, 4H) matmul + bias.
    xproj = (jnp.dot(x_ref[...], wih_t, preferred_element_type=jnp.float32)
             + bias)                                            # (W*BP, 4H)

    # Loop-invariant recurrent weight, cast once to bf16 -> single MXU pass per step.
    whh_bf = big_ref[0:H, :].astype(jnp.bfloat16)               # (H, 4H)

    h = jnp.zeros((BP, H), jnp.float32)
    c = jnp.zeros((BP, H), jnp.float32)

    # Fully unrolled recurrence; every slice / offset is static.
    for t in range(W):
        xg = xproj[t * BP:(t + 1) * BP, :]                      # (BP, 4H), vreg-aligned slice
        if t == 0:
            gates = xg                                          # h_{-1} == 0: skip the matmul
        else:
            gates = xg + jnp.dot(h.astype(jnp.bfloat16), whh_bf,
                                 preferred_element_type=jnp.float32)
        # One EUP pass over the full (BP, 4H) tile.  The g-gate pre-activation was pre-doubled
        # in the prepack, so tanh(g_pre) = 2*sigmoid(2*g_pre) - 1 comes from the same sigmoid.
        sig = jax.nn.sigmoid(gates)
        i_g = sig[:, 0 * H:1 * H]
        f_g = sig[:, 1 * H:2 * H]
        g_g = 2.0 * sig[:, 2 * H:3 * H] - 1.0
        o_g = sig[:, 3 * H:4 * H]
        c = i_g * g_g if t == 0 else f_g * c + i_g * g_g        # PyTorch gate order i,f,g,o
        h = o_g * jnp.tanh(c)
        # Stash h_t for the epilogue linear1 (feeds nothing on the recurrence chain).
        hstash_ref[:, t * H:(t + 1) * H] = h

    # ---------------- epilogue: linear1 as one MXU matmul, linear2 as VPU dot ----------------
    w1_t = big_ref[H:, :]                                       # (W*H, HALF)
    acc = jnp.dot(hstash_ref[...], w1_t,
                  preferred_element_type=jnp.float32)           # (BP, HALF)
    y1 = jnp.maximum(acc + b1, 0.0)                             # ReLU(linear1)
    # TARGET == 1: VPU multiply + lane reduce beats an N=1 MXU round trip.
    y2 = jnp.sum(y1 * w2, axis=-1, keepdims=True) + b2
    out_ref[...] = y2[:out_ref.shape[0], :]                     # drop padded batch rows


def init_params(key):
    ks = jax.random.split(key, 8)
    scale = 0.1
    return {
        "weight_ih": scale * jax.random.normal(ks[0], (4 * HIDDEN, FEATURE), jnp.float32),
        "weight_hh": scale * jax.random.normal(ks[1], (4 * HIDDEN, HIDDEN), jnp.float32),
        "bias_ih":   scale * jax.random.normal(ks[2], (4 * HIDDEN,), jnp.float32),
        "bias_hh":   scale * jax.random.normal(ks[3], (4 * HIDDEN,), jnp.float32),
        "w1":        scale * jax.random.normal(ks[4], (HALF, HIDDEN * WINDOW), jnp.float32),
        "b1":        scale * jax.random.normal(ks[5], (HALF,), jnp.float32),
        "w2":        scale * jax.random.normal(ks[6], (TARGET, HALF), jnp.float32),
        "b2":        scale * jax.random.normal(ks[7], (TARGET,), jnp.float32),
    }


def prepack_params(p):
    """One-time weight repacking (NOT on the per-call path)."""
    H, W, F = HIDDEN, WINDOW, FEATURE
    G = 4 * H
    # Pre-double the g-gate rows so one in-kernel sigmoid covers all four gates
    # (tanh(x) = 2*sigmoid(2x) - 1).  PyTorch gate order along dim 0 is [i, f, g, o].
    g_scale = jnp.ones((G,), jnp.float32).at[2 * H:3 * H].set(2.0)

    wih_t = p["weight_ih"].T * g_scale[None, :]                     # (F, 4H)
    whh_t = p["weight_hh"].T * g_scale[None, :]                     # (H, 4H)
    bias = (p["bias_ih"] + p["bias_hh"]) * g_scale                  # (4H,)
    w1_t = p["w1"].T                                                # (W*H, HALF), flatten order t*H + h

    # Packed small-parameter slab: (F+4, 128) == one (8,128) vreg tile.  (4H == HALF == 128.)
    small = jnp.concatenate([
        wih_t,
        bias[None, :],
        p["b1"].reshape(1, HALF),
        p["w2"].reshape(1, HALF),
        jnp.broadcast_to(p["b2"].reshape(1, 1), (1, HALF)),
    ], axis=0)

    # Big slab: loop-invariant Whh^T followed by the epilogue linear1 weight.
    big = jnp.concatenate([whh_t, w1_t], axis=0)                    # (H + W*H, 128)
    return {"small": small, "big": big}


@jax.jit
def lstm_module_forward(x, packed):
    """x: (batch, window, feature) float32 -> (batch, target, 1)"""
    B, W, F = x.shape
    assert B <= BPAD, "static batch pad assumes batch <= 8"
    x_seq = jnp.transpose(x, (1, 0, 2))                             # (W, B, F)
    # Pad batch to 8 rows so per-timestep slices are sublane-aligned; padded rows run the
    # LSTM on zero inputs and are discarded at the output store.
    x_pad = jnp.pad(x_seq, ((0, 0), (0, BPAD - B), (0, 0)))
    x2d = x_pad.reshape(W * BPAD, F)                                # (W*BPAD, F)

    vmem = pl.BlockSpec(memory_space=pltpu.MemorySpace.VMEM)
    # Single grid point: the whole problem is a few KB, pure latency.  If batch ever grows,
    # add a grid axis over batch with dimension_semantics=("parallel",) for the 2nd core.
    out = pl.pallas_call(
        lstm_mlp_kernel,
        out_shape=jax.ShapeDtypeStruct((B, TARGET), jnp.float32),
        in_specs=[vmem, vmem, vmem],
        out_specs=vmem,
        scratch_shapes=[pltpu.VMEM((BPAD, W * HIDDEN), jnp.float32)],
    )(x2d, packed["small"], packed["big"])

    return out[:, :, None]                                          # (B, target, 1)


def reference_forward(x, p):
    """Pure-JAX f32 reference (same math as PyTorch LSTM + MLP head)."""
    B, W, F = x.shape
    H = HIDDEN
    x_seq = jnp.transpose(x, (1, 0, 2))
    wih_t, whh_t = p["weight_ih"].T, p["weight_hh"].T
    bias = p["bias_ih"] + p["bias_hh"]

    def step(carry, x_t):
        h, c = carry
        g = x_t @ wih_t + h @ whh_t + bias
        i = jax.nn.sigmoid(g[:, 0 * H:1 * H])
        f = jax.nn.sigmoid(g[:, 1 * H:2 * H])
        gg = jnp.tanh(g[:, 2 * H:3 * H])
        o = jax.nn.sigmoid(g[:, 3 * H:4 * H])
        c = f * c + i * gg
        h = o * jnp.tanh(c)
        return (h, c), h

    h0 = jnp.zeros((B, H), jnp.float32)
    (_, _), hs = jax.lax.scan(step, (h0, h0), x_seq)                # hs: (W, B, H)
    flat = jnp.transpose(hs, (1, 0, 2)).reshape(B, W * H)           # flatten(batch, W*H)
    y1 = jnp.maximum(flat @ p["w1"].T + p["b1"], 0.0)
    y2 = y1 @ p["w2"].T + p["b2"]
    return y2[:, :, None]


if __name__ == "__main__":
    key = jax.random.PRNGKey(0)
    kx, kp = jax.random.split(key)
    x = jax.random.normal(kx, (BATCH, WINDOW, FEATURE), jnp.float32)
    params = init_params(kp)
    packed = prepack_params(params)      # one-time repack; not on the per-call path

    out = jax.block_until_ready(lstm_module_forward(x, packed))
    ref = reference_forward(x, params)

    assert out.shape == (BATCH, TARGET, 1), out.shape
    # Tolerance relaxed deliberately: the recurrent matmul runs with bf16 MXU operands
    # (f32 accumulation); everything else is f32.
    assert jnp.allclose(out, ref, atol=2e-2, rtol=2e-2), (out, ref)

    print("KERNEL_OK")
</pallas_src>

<mosaic_0001>
module attributes {stable_mosaic.version = 11 : i64} {
  func.func @lstm_mlp_kernel(%arg0: memref<64x4xf32, #tpu.memory_space<vmem>>, %arg1: memref<8x128xf32, #tpu.memory_space<vmem>>, %arg2: memref<288x128xf32, #tpu.memory_space<vmem>>, %arg3: memref<4x1xf32, #tpu.memory_space<vmem>>, %arg4: memref<8x256xf32, #tpu.memory_space<vmem>>) attributes {dimension_semantics = [], scalar_prefetch = 0 : i64, scratch_operands = 1 : i64, tpu.core_type = #tpu.core_type<tc>} {
    %c0 = arith.constant 0 : index
    %c0_0 = arith.constant 0 : index
    %0 = vector.load %arg1[%c0, %c0_0] : memref<8x128xf32, #tpu.memory_space<vmem>>, vector<4x128xf32>
    %c4 = arith.constant 4 : index
    %c0_1 = arith.constant 0 : index
    %1 = vector.load %arg1[%c4, %c0_1] : memref<8x128xf32, #tpu.memory_space<vmem>>, vector<1x128xf32>
    %c5 = arith.constant 5 : index
    %c0_2 = arith.constant 0 : index
    %2 = vector.load %arg1[%c5, %c0_2] : memref<8x128xf32, #tpu.memory_space<vmem>>, vector<1x128xf32>
    %c6 = arith.constant 6 : index
    %c0_3 = arith.constant 0 : index
    %3 = vector.load %arg1[%c6, %c0_3] : memref<8x128xf32, #tpu.memory_space<vmem>>, vector<1x128xf32>
    %c7 = arith.constant 7 : index
    %c0_4 = arith.constant 0 : index
    %4 = vector.load %arg1[%c7, %c0_4] : memref<8x128xf32, #tpu.memory_space<vmem>>, vector<1x1xf32>
    %c0_5 = arith.constant 0 : index
    %c0_6 = arith.constant 0 : index
    %5 = vector.load %arg0[%c0_5, %c0_6] : memref<64x4xf32, #tpu.memory_space<vmem>>, vector<64x4xf32>
    %cst = arith.constant dense<0.000000e+00> : vector<64x128xf32>
    %6 = tpu.matmul %5, %0, %cst {dimension_numbers = #tpu.dot_dimension_numbers<[1], [0], [0], [1], [0, 0, 1, 1], [], []>} : vector<64x4xf32>, vector<4x128xf32>, vector<64x128xf32> -> vector<64x128xf32>
    %7 = vector.broadcast %1 : vector<1x128xf32> to vector<64x128xf32>
    %8 = arith.addf %6, %7 : vector<64x128xf32>
    %c0_7 = arith.constant 0 : index
    %c0_8 = arith.constant 0 : index
    %9 = vector.load %arg2[%c0_7, %c0_8] : memref<288x128xf32, #tpu.memory_space<vmem>>, vector<32x128xf32>
    %10 = arith.truncf %9 : vector<32x128xf32> to vector<32x128xbf16>
    %11 = vector.extract_strided_slice %8 {offsets = [0, 0], sizes = [8, 128], strides = [1, 1]} : vector<64x128xf32> to vector<8x128xf32>
    %12 = arith.negf %11 : vector<8x128xf32>
    %13 = math.exp %12 : vector<8x128xf32>
    %cst_9 = arith.constant 1.000000e+00 : f32
    %14 = vector.broadcast %cst_9 : f32 to vector<8x128xf32>
    %15 = arith.addf %14, %13 : vector<8x128xf32>
    %16 = arith.divf %14, %15 : vector<8x128xf32>
    %17 = vector.extract_strided_slice %16 {offsets = [0, 0], sizes = [8, 32], strides = [1, 1]} : vector<8x128xf32> to vector<8x32xf32>
    %18 = vector.extract_strided_slice %16 {offsets = [0, 64], sizes = [8, 32], strides = [1, 1]} : vector<8x128xf32> to vector<8x32xf32>
    %cst_10 = arith.constant 2.000000e+00 : f32
    %19 = vector.broadcast %cst_10 : f32 to vector<8x32xf32>
    %20 = arith.mulf %19, %18 : vector<8x32xf32>
    %cst_11 = arith.constant 1.000000e+00 : f32
    %21 = vector.broadcast %cst_11 : f32 to vector<8x32xf32>
    %22 = arith.subf %20, %21 : vector<8x32xf32>
    %23 = vector.extract_strided_slice %16 {offsets = [0, 96], sizes = [8, 32], strides = [1, 1]} : vector<8x128xf32> to vector<8x32xf32>
    %24 = arith.mulf %17, %22 : vector<8x32xf32>
    %25 = math.tanh %24 : vector<8x32xf32>
    %26 = arith.mulf %23, %25 : vector<8x32xf32>
    %c0_12 = arith.constant 0 : index
    %c0_13 = arith.constant 0 : index
    %27 = vector.load %arg4[%c0_12, %c0_13] : memref<8x256xf32, #tpu.memory_space<vmem>>, vector<8x32xf32>
    tpu.vector_store %arg4[%c0_12, %c0_13], %26 {strides = array<i32>} : memref<8x256xf32, #tpu.memory_space<vmem>>, vector<8x32xf32>,
    %28 = vector.extract_strided_slice %8 {offsets = [8, 0], sizes = [8, 128], strides = [1, 1]} : vector<64x128xf32> to vector<8x128xf32>
    %29 = arith.truncf %26 : vector<8x32xf32> to vector<8x32xbf16>
    %cst_14 = arith.constant dense<0.000000e+00> : vector<8x128xf32>
    %30 = tpu.matmul %29, %10, %cst_14 {dimension_numbers = #tpu.dot_dimension_numbers<[1], [0], [0], [1], [0, 0, 1, 1], [], []>} : vector<8x32xbf16>, vector<32x128xbf16>, vector<8x128xf32> -> vector<8x128xf32>
    %31 = arith.addf %28, %30 : vector<8x128xf32>
    %32 = arith.negf %31 : vector<8x128xf32>
    %33 = math.exp %32 : vector<8x128xf32>
    %cst_15 = arith.constant 1.000000e+00 : f32
    %34 = vector.broadcast %cst_15 : f32 to vector<8x128xf32>
    %35 = arith.addf %34, %33 : vector<8x128xf32>
    %36 = arith.divf %34, %35 : vector<8x128xf32>
    %37 = vector.extract_strided_slice %36 {offsets = [0, 0], sizes = [8, 32], strides = [1, 1]} : vector<8x128xf32> to vector<8x32xf32>
    %38 = vector.extract_strided_slice %36 {offsets = [0, 32], sizes = [8, 32], strides = [1, 1]} : vector<8x128xf32> to vector<8x32xf32>
    %39 = vector.extract_strided_slice %36 {offsets = [0, 64], sizes = [8, 32], strides = [1, 1]} : vector<8x128xf32> to vector<8x32xf32>
    %cst_16 = arith.constant 2.000000e+00 : f32
    %40 = vector.broadcast %cst_16 : f32 to vector<8x32xf32>
    %41 = arith.mulf %40, %39 : vector<8x32xf32>
    %cst_17 = arith.constant 1.000000e+00 : f32
    %42 = vector.broadcast %cst_17 : f32 to vector<8x32xf32>
    %43 = arith.subf %41, %42 : vector<8x32xf32>
    %44 = vector.extract_strided_slice %36 {offsets = [0, 96], sizes = [8, 32], strides = [1, 1]} : vector<8x128xf32> to vector<8x32xf32>
    %45 = arith.mulf %38, %24 : vector<8x32xf32>
    %46 = arith.mulf %37, %43 : vector<8x32xf32>
    %47 = arith.addf %45, %46 : vector<8x32xf32>
    %48 = math.tanh %47 : vector<8x32xf32>
    %49 = arith.mulf %44, %48 : vector<8x32xf32>
    %c0_18 = arith.constant 0 : index
    %c32 = arith.constant 32 : index
    %50 = vector.load %arg4[%c0_18, %c32] : memref<8x256xf32, #tpu.memory_space<vmem>>, vector<8x32xf32>
    tpu.vector_store %arg4[%c0_18, %c32], %49 {strides = array<i32>} : memref<8x256xf32, #tpu.memory_space<vmem>>, vector<8x32xf32>,
    %51 = vector.extract_strided_slice %8 {offsets = [16, 0], sizes = [8, 128], strides = [1, 1]} : vector<64x128xf32> to vector<8x128xf32>
    %52 = arith.truncf %49 : vector<8x32xf32> to vector<8x32xbf16>
    %cst_19 = arith.constant dense<0.000000e+00> : vector<8x128xf32>
    %53 = tpu.matmul %52, %10, %cst_19 {dimension_numbers = #tpu.dot_dimension_numbers<[1], [0], [0], [1], [0, 0, 1, 1], [], []>} : vector<8x32xbf16>, vector<32x128xbf16>, vector<8x128xf32> -> vector<8x128xf32>
    %54 = arith.addf %51, %53 : vector<8x128xf32>
    %55 = arith.negf %54 : vector<8x128xf32>
    %56 = math.exp %55 : vector<8x128xf32>
    %cst_20 = arith.constant 1.000000e+00 : f32
    %57 = vector.broadcast %cst_20 : f32 to vector<8x128xf32>
    %58 = arith.addf %57, %56 : vector<8x128xf32>
    %59 = arith.divf %57, %58 : vector<8x128xf32>
    %60 = vector.extract_strided_slice %59 {offsets = [0, 0], sizes = [8, 32], strides = [1, 1]} : vector<8x128xf32> to vector<8x32xf32>
    %61 = vector.extract_strided_slice %59 {offsets = [0, 32], sizes = [8, 32], strides = [1, 1]} : vector<8x128xf32> to vector<8x32xf32>
    %62 = vector.extract_strided_slice %59 {offsets = [0, 64], sizes = [8, 32], strides = [1, 1]} : vector<8x128xf32> to vector<8x32xf32>
    %cst_21 = arith.constant 2.000000e+00 : f32
    %63 = vector.broadcast %cst_21 : f32 to vector<8x32xf32>
    %64 = arith.mulf %63, %62 : vector<8x32xf32>
    %cst_22 = arith.constant 1.000000e+00 : f32
    %65 = vector.broadcast %cst_22 : f32 to vector<8x32xf32>
    %66 = arith.subf %64, %65 : vector<8x32xf32>
    %67 = vector.extract_strided_slice %59 {offsets = [0, 96], sizes = [8, 32], strides = [1, 1]} : vector<8x128xf32> to vector<8x32xf32>
    %68 = arith.mulf %61, %47 : vector<8x32xf32>
    %69 = arith.mulf %60, %66 : vector<8x32xf32>
    %70 = arith.addf %68, %69 : vector<8x32xf32>
    %71 = math.tanh %70 : vector<8x32xf32>
    %72 = arith.mulf %67, %71 : vector<8x32xf32>
    %c0_23 = arith.constant 0 : index
    %c64 = arith.constant 64 : index
    %73 = vector.load %arg4[%c0_23, %c64] : memref<8x256xf32, #tpu.memory_space<vmem>>, vector<8x32xf32>
    tpu.vector_store %arg4[%c0_23, %c64], %72 {strides = array<i32>} : memref<8x256xf32, #tpu.memory_space<vmem>>, vector<8x32xf32>,
    %74 = vector.extract_strided_slice %8 {offsets = [24, 0], sizes = [8, 128], strides = [1, 1]} : vector<64x128xf32> to vector<8x128xf32>
    %75 = arith.truncf %72 : vector<8x32xf32> to vector<8x32xbf16>
    %cst_24 = arith.constant dense<0.000000e+00> : vector<8x128xf32>
    %76 = tpu.matmul %75, %10, %cst_24 {dimension_numbers = #tpu.dot_dimension_numbers<[1], [0], [0], [1], [0, 0, 1, 1], [], []>} : vector<8x32xbf16>, vector<32x128xbf16>, vector<8x128xf32> -> vector<8x128xf32>
    %77 = arith.addf %74, %76 : vector<8x128xf32>
    %78 = arith.negf %77 : vector<8x128xf32>
    %79 = math.exp %78 : vector<8x128xf32>
    %cst_25 = arith.constant 1.000000e+00 : f32
    %80 = vector.broadcast %cst_25 : f32 to vector<8x128xf32>
    %81 = arith.addf %80, %79 : vector<8x128xf32>
    %82 = arith.divf %80, %81 : vector<8x128xf32>
    %83 = vector.extract_strided_slice %82 {offsets = [0, 0], sizes = [8, 32], strides = [1, 1]} : vector<8x128xf32> to vector<8x32xf32>
    %84 = vector.extract_strided_slice %82 {offsets = [0, 32], sizes = [8, 32], strides = [1, 1]} : vector<8x128xf32> to vector<8x32xf32>
    %85 = vector.extract_strided_slice %82 {offsets = [0, 64], sizes = [8, 32], strides = [1, 1]} : vector<8x128xf32> to vector<8x32xf32>
    %cst_26 = arith.constant 2.000000e+00 : f32
    %86 = vector.broadcast %cst_26 : f32 to vector<8x32xf32>
    %87 = arith.mulf %86, %85 : vector<8x32xf32>
    %cst_27 = arith.constant 1.000000e+00 : f32
    %88 = vector.broadcast %cst_27 : f32 to vector<8x32xf32>
    %89 = arith.subf %87, %88 : vector<8x32xf32>
    %90 = vector.extract_strided_slice %82 {offsets = [0, 96], sizes = [8, 32], strides = [1, 1]} : vector<8x128xf32> to vector<8x32xf32>
    %91 = arith.mulf %84, %70 : vector<8x32xf32>
    %92 = arith.mulf %83, %89 : vector<8x32xf32>
    %93 = arith.addf %91, %92 : vector<8x32xf32>
    %94 = math.tanh %93 : vector<8x32xf32>
    %95 = arith.mulf %90, %94 : vector<8x32xf32>
    %c0_28 = arith.constant 0 : index
    %c96 = arith.constant 96 : index
    %96 = vector.load %arg4[%c0_28, %c96] : memref<8x256xf32, #tpu.memory_space<vmem>>, vector<8x32xf32>
    tpu.vector_store %arg4[%c0_28, %c96], %95 {strides = array<i32>} : memref<8x256xf32, #tpu.memory_space<vmem>>, vector<8x32xf32>,
    %97 = vector.extract_strided_slice %8 {offsets = [32, 0], sizes = [8, 128], strides = [1, 1]} : vector<64x128xf32> to vector<8x128xf32>
    %98 = arith.truncf %95 : vector<8x32xf32> to vector<8x32xbf16>
    %cst_29 = arith.constant dense<0.000000e+00> : vector<8x128xf32>
    %99 = tpu.matmul %98, %10, %cst_29 {dimension_numbers = #tpu.dot_dimension_numbers<[1], [0], [0], [1], [0, 0, 1, 1], [], []>} : vector<8x32xbf16>, vector<32x128xbf16>, vector<8x128xf32> -> vector<8x128xf32>
    %100 = arith.addf %97, %99 : vector<8x128xf32>
    %101 = arith.negf %100 : vector<8x128xf32>
    %102 = math.exp %101 : vector<8x128xf32>
    %cst_30 = arith.constant 1.000000e+00 : f32
    %103 = vector.broadcast %cst_30 : f32 to vector<8x128xf32>
    %104 = arith.addf %103, %102 : vector<8x128xf32>
    %105 = arith.divf %103, %104 : vector<8x128xf32>
    %106 = vector.extract_strided_slice %105 {offsets = [0, 0], sizes = [8, 32], strides = [1, 1]} : vector<8x128xf32> to vector<8x32xf32>
    %107 = vector.extract_strided_slice %105 {offsets = [0, 32], sizes = [8, 32], strides = [1, 1]} : vector<8x128xf32> to vector<8x32xf32>
    %108 = vector.extract_strided_slice %105 {offsets = [0, 64], sizes = [8, 32], strides = [1, 1]} : vector<8x128xf32> to vector<8x32xf32>
    %cst_31 = arith.constant 2.000000e+00 : f32
    %109 = vector.broadcast %cst_31 : f32 to vector<8x32xf32>
    %110 = arith.mulf %109, %108 : vector<8x32xf32>
    %cst_32 = arith.constant 1.000000e+00 : f32
    %111 = vector.broadcast %cst_32 : f32 to vector<8x32xf32>
    %112 = arith.subf %110, %111 : vector<8x32xf32>
    %113 = vector.extract_strided_slice %105 {offsets = [0, 96], sizes = [8, 32], strides = [1, 1]} : vector<8x128xf32> to vector<8x32xf32>
    %114 = arith.mulf %107, %93 : vector<8x32xf32>
    %115 = arith.mulf %106, %112 : vector<8x32xf32>
    %116 = arith.addf %114, %115 : vector<8x32xf32>
    %117 = math.tanh %116 : vector<8x32xf32>
    %118 = arith.mulf %113, %117 : vector<8x32xf32>
    %c0_33 = arith.constant 0 : index
    %c128 = arith.constant 128 : index
    %119 = vector.load %arg4[%c0_33, %c128] : memref<8x256xf32, #tpu.memory_space<vmem>>, vector<8x32xf32>
    tpu.vector_store %arg4[%c0_33, %c128], %118 {strides = array<i32>} : memref<8x256xf32, #tpu.memory_space<vmem>>, vector<8x32xf32>,
    %120 = vector.extract_strided_slice %8 {offsets = [40, 0], sizes = [8, 128], strides = [1, 1]} : vector<64x128xf32> to vector<8x128xf32>
    %121 = arith.truncf %118 : vector<8x32xf32> to vector<8x32xbf16>
    %cst_34 = arith.constant dense<0.000000e+00> : vector<8x128xf32>
    %122 = tpu.matmul %121, %10, %cst_34 {dimension_numbers = #tpu.dot_dimension_numbers<[1], [0], [0], [1], [0, 0, 1, 1], [], []>} : vector<8x32xbf16>, vector<32x128xbf16>, vector<8x128xf32> -> vector<8x128xf32>
    %123 = arith.addf %120, %122 : vector<8x128xf32>
    %124 = arith.negf %123 : vector<8x128xf32>
    %125 = math.exp %124 : vector<8x128xf32>
    %cst_35 = arith.constant 1.000000e+00 : f32
    %126 = vector.broadcast %cst_35 : f32 to vector<8x128xf32>
    %127 = arith.addf %126, %125 : vector<8x128xf32>
    %128 = arith.divf %126, %127 : vector<8x128xf32>
    %129 = vector.extract_strided_slice %128 {offsets = [0, 0], sizes = [8, 32], strides = [1, 1]} : vector<8x128xf32> to vector<8x32xf32>
    %130 = vector.extract_strided_slice %128 {offsets = [0, 32], sizes = [8, 32], strides = [1, 1]} : vector<8x128xf32> to vector<8x32xf32>
    %131 = vector.extract_strided_slice %128 {offsets = [0, 64], sizes = [8, 32], strides = [1, 1]} : vector<8x128xf32> to vector<8x32xf32>
    %cst_36 = arith.constant 2.000000e+00 : f32
    %132 = vector.broadcast %cst_36 : f32 to vector<8x32xf32>
    %133 = arith.mulf %132, %131 : vector<8x32xf32>
    %cst_37 = arith.constant 1.000000e+00 : f32
    %134 = vector.broadcast %cst_37 : f32 to vector<8x32xf32>
    %135 = arith.subf %133, %134 : vector<8x32xf32>
    %136 = vector.extract_strided_slice %128 {offsets = [0, 96], sizes = [8, 32], strides = [1, 1]} : vector<8x128xf32> to vector<8x32xf32>
    %137 = arith.mulf %130, %116 : vector<8x32xf32>
    %138 = arith.mulf %129, %135 : vector<8x32xf32>
    %139 = arith.addf %137, %138 : vector<8x32xf32>
    %140 = math.tanh %139 : vector<8x32xf32>
    %141 = arith.mulf %136, %140 : vector<8x32xf32>
    %c0_38 = arith.constant 0 : index
    %c160 = arith.constant 160 : index
    %142 = vector.load %arg4[%c0_38, %c160] : memref<8x256xf32, #tpu.memory_space<vmem>>, vector<8x32xf32>
    tpu.vector_store %arg4[%c0_38, %c160], %141 {strides = array<i32>} : memref<8x256xf32, #tpu.memory_space<vmem>>, vector<8x32xf32>,
    %143 = vector.extract_strided_slice %8 {offsets = [48, 0], sizes = [8, 128], strides = [1, 1]} : vector<64x128xf32> to vector<8x128xf32>
    %144 = arith.truncf %141 : vector<8x32xf32> to vector<8x32xbf16>
    %cst_39 = arith.constant dense<0.000000e+00> : vector<8x128xf32>
    %145 = tpu.matmul %144, %10, %cst_39 {dimension_numbers = #tpu.dot_dimension_numbers<[1], [0], [0], [1], [0, 0, 1, 1], [], []>} : vector<8x32xbf16>, vector<32x128xbf16>, vector<8x128xf32> -> vector<8x128xf32>
    %146 = arith.addf %143, %145 : vector<8x128xf32>
    %147 = arith.negf %146 : vector<8x128xf32>
    %148 = math.exp %147 : vector<8x128xf32>
    %cst_40 = arith.constant 1.000000e+00 : f32
    %149 = vector.broadcast %cst_40 : f32 to vector<8x128xf32>
    %150 = arith.addf %149, %148 : vector<8x128xf32>
    %151 = arith.divf %149, %150 : vector<8x128xf32>
    %152 = vector.extract_strided_slice %151 {offsets = [0, 0], sizes = [8, 32], strides = [1, 1]} : vector<8x128xf32> to vector<8x32xf32>
    %153 = vector.extract_strided_slice %151 {offsets = [0, 32], sizes = [8, 32], strides = [1, 1]} : vector<8x128xf32> to vector<8x32xf32>
    %154 = vector.extract_strided_slice %151 {offsets = [0, 64], sizes = [8, 32], strides = [1, 1]} : vector<8x128xf32> to vector<8x32xf32>
    %cst_41 = arith.constant 2.000000e+00 : f32
    %155 = vector.broadcast %cst_41 : f32 to vector<8x32xf32>
    %156 = arith.mulf %155, %154 : vector<8x32xf32>
    %cst_42 = arith.constant 1.000000e+00 : f32
    %157 = vector.broadcast %cst_42 : f32 to vector<8x32xf32>
    %158 = arith.subf %156, %157 : vector<8x32xf32>
    %159 = vector.extract_strided_slice %151 {offsets = [0, 96], sizes = [8, 32], strides = [1, 1]} : vector<8x128xf32> to vector<8x32xf32>
    %160 = arith.mulf %153, %139 : vector<8x32xf32>
    %161 = arith.mulf %152, %158 : vector<8x32xf32>
    %162 = arith.addf %160, %161 : vector<8x32xf32>
    %163 = math.tanh %162 : vector<8x32xf32>
    %164 = arith.mulf %159, %163 : vector<8x32xf32>
    %c0_43 = arith.constant 0 : index
    %c192 = arith.constant 192 : index
    %165 = vector.load %arg4[%c0_43, %c192] : memref<8x256xf32, #tpu.memory_space<vmem>>, vector<8x32xf32>
    tpu.vector_store %arg4[%c0_43, %c192], %164 {strides = array<i32>} : memref<8x256xf32, #tpu.memory_space<vmem>>, vector<8x32xf32>,
    %166 = vector.extract_strided_slice %8 {offsets = [56, 0], sizes = [8, 128], strides = [1, 1]} : vector<64x128xf32> to vector<8x128xf32>
    %167 = arith.truncf %164 : vector<8x32xf32> to vector<8x32xbf16>
    %cst_44 = arith.constant dense<0.000000e+00> : vector<8x128xf32>
    %168 = tpu.matmul %167, %10, %cst_44 {dimension_numbers = #tpu.dot_dimension_numbers<[1], [0], [0], [1], [0, 0, 1, 1], [], []>} : vector<8x32xbf16>, vector<32x128xbf16>, vector<8x128xf32> -> vector<8x128xf32>
    %169 = arith.addf %166, %168 : vector<8x128xf32>
    %170 = arith.negf %169 : vector<8x128xf32>
    %171 = math.exp %170 : vector<8x128xf32>
    %cst_45 = arith.constant 1.000000e+00 : f32
    %172 = vector.broadcast %cst_45 : f32 to vector<8x128xf32>
    %173 = arith.addf %172, %171 : vector<8x128xf32>
    %174 = arith.divf %172, %173 : vector<8x128xf32>
    %175 = vector.extract_strided_slice %174 {offsets = [0, 0], sizes = [8, 32], strides = [1, 1]} : vector<8x128xf32> to vector<8x32xf32>
    %176 = vector.extract_strided_slice %174 {offsets = [0, 32], sizes = [8, 32], strides = [1, 1]} : vector<8x128xf32> to vector<8x32xf32>
    %177 = vector.extract_strided_slice %174 {offsets = [0, 64], sizes = [8, 32], strides = [1, 1]} : vector<8x128xf32> to vector<8x32xf32>
    %cst_46 = arith.constant 2.000000e+00 : f32
    %178 = vector.broadcast %cst_46 : f32 to vector<8x32xf32>
    %179 = arith.mulf %178, %177 : vector<8x32xf32>
    %cst_47 = arith.constant 1.000000e+00 : f32
    %180 = vector.broadcast %cst_47 : f32 to vector<8x32xf32>
    %181 = arith.subf %179, %180 : vector<8x32xf32>
    %182 = vector.extract_strided_slice %174 {offsets = [0, 96], sizes = [8, 32], strides = [1, 1]} : vector<8x128xf32> to vector<8x32xf32>
    %183 = arith.mulf %176, %162 : vector<8x32xf32>
    %184 = arith.mulf %175, %181 : vector<8x32xf32>
    %185 = arith.addf %183, %184 : vector<8x32xf32>
    %186 = math.tanh %185 : vector<8x32xf32>
    %187 = arith.mulf %182, %186 : vector<8x32xf32>
    %c0_48 = arith.constant 0 : index
    %c224 = arith.constant 224 : index
    %188 = vector.load %arg4[%c0_48, %c224] : memref<8x256xf32, #tpu.memory_space<vmem>>, vector<8x32xf32>
    tpu.vector_store %arg4[%c0_48, %c224], %187 {strides = array<i32>} : memref<8x256xf32, #tpu.memory_space<vmem>>, vector<8x32xf32>,
    %c32_49 = arith.constant 32 : index
    %c0_50 = arith.constant 0 : index
    %189 = vector.load %arg2[%c32_49, %c0_50] : memref<288x128xf32, #tpu.memory_space<vmem>>, vector<256x128xf32>
    %c0_51 = arith.constant 0 : index
    %c0_52 = arith.constant 0 : index
    %190 = vector.load %arg4[%c0_51, %c0_52] : memref<8x256xf32, #tpu.memory_space<vmem>>, vector<8x256xf32>
    %cst_53 = arith.constant dense<0.000000e+00> : vector<8x128xf32>
    %191 = tpu.matmul %190, %189, %cst_53 {dimension_numbers = #tpu.dot_dimension_numbers<[1], [0], [0], [1], [0, 0, 1, 1], [], []>} : vector<8x256xf32>, vector<256x128xf32>, vector<8x128xf32> -> vector<8x128xf32>
    %192 = vector.broadcast %2 : vector<1x128xf32> to vector<8x128xf32>
    %193 = arith.addf %191, %192 : vector<8x128xf32>
    %cst_54 = arith.constant 0.000000e+00 : f32
    %194 = vector.broadcast %cst_54 : f32 to vector<8x128xf32>
    %195 = arith.maximumf %193, %194 : vector<8x128xf32>
    %196 = vector.broadcast %3 : vector<1x128xf32> to vector<8x128xf32>
    %197 = arith.mulf %195, %196 : vector<8x128xf32>
    %cst_55 = arith.constant dense<0.000000e+00> : vector<8xf32>
    %198 = vector.multi_reduction <add>, %197, %cst_55 [1] : vector<8x128xf32> to vector<8xf32>
    %199 = vector.shape_cast %198 : vector<8xf32> to vector<8x1xf32>
    %200 = vector.broadcast %4 : vector<1x1xf32> to vector<8x1xf32>
    %201 = arith.addf %199, %200 : vector<8x1xf32>
    %202 = vector.extract_strided_slice %201 {offsets = [0, 0], sizes = [4, 1], strides = [1, 1]} : vector<8x1xf32> to vector<4x1xf32>
    %c0_56 = arith.constant 0 : index
    %c0_57 = arith.constant 0 : index
    %203 = vector.load %arg3[%c0_56, %c0_57] : memref<4x1xf32, #tpu.memory_space<vmem>>, vector<4x1xf32>
    tpu.vector_store %arg3[%c0_56, %c0_57], %202 {strides = array<i32>} : memref<4x1xf32, #tpu.memory_space<vmem>>, vector<4x1xf32>,
    return
  }
}

</mosaic_0001>

<bundles_post_ra>
// kernel: lstm_module_forward.1
= control target key start
LH: loop header
LB: loop body
LE: loop exit
PB: predicated region body
PF: predicated region fallthrough
CT: control target
= control target key end

     0   :  { %8 = vsyncpa [#allocation4], 0  ;;  %s811_s15 = smov [#allocation3]   ;;  %s812_s17 = smov 128   ;;  %s990_s0 = inlined_call_operand.vmem [shape: f32[64,4], index: 0, kind: input, shape index: {}]   ;;  %s991_s1 = inlined_call_operand.vmem [shape: f32[8,128], index: 1, kind: input, shape index: {}]   ;;  %s992_s2 = inlined_call_operand.hbm [shape: f32[288,128], index: 2, kind: input, shape index: {}]   ;;  %s993_s3 = inlined_call_operand.vmem [shape: f32[4,1], index: 3, kind: output, shape index: {}]  }
   0x1   :  { %s17_s14 = sshll.u32 %s992_s2, 4  ;;  %s19_s16 = sshll.u32 %s811_s15, 4  ;;  %s18_s14 = int_to_ptr.hbm [resolvable:$true] %s17_s14  ;;  %s20_s16 = int_to_ptr.vmem [resolvable:$true] %s19_s16 }
   0x2   :  { %s813_s18 = smov 8  }
   0x3   :  { %25 = dma.hbm_to_vmem [thread:$0]  %s18_s14, 4608, %s20_s16, [#allocation4], %s812_s17, %s812_s17, %s813_s18  }
   0x4   :  { %809 = dma.done.wait [#allocation4], 4608  }
   0x5   :  { %810 = vsyncadd [#allocation4], 4294962688  ;;  %vm70_vm0 = vcmask 1043456   ;;  %vm45_vm1 = vcmask 31744   ;;  %v31_v0 = vld [vmem:[%s991_s1] sm:$0xf] }
   0x6   :  { %v36_v1 = vld [vmem:[%s990_s0] sm:$0xff]  ;;  %695 = vmatpush.msk.msra.mxu0 %vm70_vm0, %v31_v0  ;;  %s814_s24 = smov 64   ;;  %s815_s25 = smov 32   ;;  %v118_v24 = vld [vmem:[#allocation3 + $0x18] sm:$0xff]  ;;  %v115_v25 = vld [vmem:[#allocation3] sm:$0xff]  ;;  %vm157_vm6 = vcmask 261120  }
   0x7   :  { %696 = vmatmul.msk.f32.vlgmr.msra.gmra.mxu0 %vm45_vm1, %v36_v1  ;;  %v850_v2 = vld [vmem:[%s991_s1 + $0x4] ss:$0 sm:$0xff]  ;;  %s816_s26 = smov 96   ;;  %v116_v27 = vld [vmem:[#allocation3 + $0x8] sm:$0xff]  ;;  %v37_v28 = vld [vmem:[%s990_s0 + $0x8] sm:$0xff] }
   0x8   :  { %v117_v23 = vld [vmem:[#allocation3 + $0x10] sm:$0xff]  ;;  %v119_v29 = vpack.c.bf16 %v116_v27, %v115_v25  ;;  %v38_v0 = vld [vmem:[%s990_s0 + $0x10] sm:$0xff] }
   0x9   :  { %v120_v26 = vpack.c.bf16 %v118_v24, %v117_v23 }
   0xb   :  { %172 = vmatpush.bf16.msra.mxu1 %v120_v26  ;;  %241 = vmatpush.bf16.msra.mxu2 %v120_v26 }
   0xc   :  { %306 = vmatpush.bf16.msra.mxu3 %v120_v26 }
   0xf   :  { %697 = vmatmul.msk.f32.gmra.mxu0 %vm45_vm1, %v37_v28  ;;  %173 = vmatpush.bf16.msra.mxu1 %v119_v29 }
  0x10   :  { %242 = vmatpush.bf16.msra.mxu2 %v119_v29  ;;  %307 = vmatpush.bf16.msra.mxu3 %v119_v29 }
  0x13   :  { %367 = vmatpush.bf16.msrb.mxu1 %v120_v26 }
  0x14   :  { %431 = vmatpush.bf16.msrb.mxu2 %v120_v26  ;;  %495 = vmatpush.bf16.msrb.mxu3 %v120_v26 }
  0x17   :  { %368 = vmatpush.bf16.msrb.mxu1 %v119_v29  ;;  %698 = vmatmul.msk.f32.gmra.mxu0 %vm45_vm1, %v38_v0 }
  0x18   :  { %432 = vmatpush.bf16.msrb.mxu2 %v119_v29  ;;  %496 = vmatpush.bf16.msrb.mxu3 %v119_v29 }
  0x84   :  { %v91_v3 = vpop.f32.mrf.mxu0 }
  0x85   :  { %v92_v4 = vadd.f32 %v850_v2, %v91_v3 }
  0x87   :  { %v704_v5 = vmul.f32 -1.442695, %v92_v4 }
  0x89   :  { %737 = vpow2.f32 %v704_v5 }
  0x8c   :  { %v94_v34 = vpop.f32.mrf.mxu0 }
  0x8d   :  { %v95_v35 = vadd.f32 %v850_v2, %v94_v34 }
  0x8f   :  { %v738_v6 = vpop.eup %737 }
  0x90   :  { %v124_v7 = vadd.f32 1.0, %v738_v6 }
  0x92   :  { %739 = vrcp.f32 %v124_v7  ;;  %v136_v11 = vand.u32 2147483648, %v124_v7  ;;  %v134_v13 = vand.u32 2147483647, %v124_v7  ;;  %vm130_vm3 = vweird.f32 %v124_v7 }
  0x94   :  { %v137_v15 = vor.u32 1.1754944e-38, %v136_v11  ;;  %vm135_vm5 = vcmp.eq.f32.partialorder %v134_v13, 8.507059e+37  ;;  %v97_v3 = vpop.f32.mrf.mxu0 }
  0x95   :  { %v98_v4 = vadd.f32 %v850_v2, %v97_v3 }
  0x98   :  { %v740_v8 = vpop.eup %739 }
  0x99   :  { %v126_v9 = vmul.f32 %v740_v8, %v124_v7  ;;  %vm131_vm2 = vweird.f32 %v740_v8 }
  0x9a   :  { %vm132_vm4 = vmor %vm130_vm3, %vm131_vm2 }
  0x9b   :  { %v127_v10 = vsub.f32 1.0, %v126_v9 }
  0x9d   :  { %v128_v12 = vmul.f32 %v740_v8, %v127_v10 }
  0x9f   :  { %v129_v14 = vadd.f32 %v740_v8, %v128_v12 }
  0xa1   :  { %v133_v16 = vsel %vm132_vm4, %v740_v8, %v129_v14 }
  0xa2   :  { %v138_v17 = vsel %vm135_vm5, %v137_v15, %v133_v16 }
  0xa3   :  { %v140_v18 = vmul.f32 2.0, %v138_v17 }
  0xa5   :  { %v705_v19 = vadd.f32 -1.0, %v140_v18 }
  0xa7   :  { %143 = vrot.lane.b32.xlu0 %v705_v19, %s814_s24 }
 0x119   :  { %v144_v20 = vpop.permute.xlu0 %143 }
 0x11a   :  { %v146_v21 = vmul.f32 %v144_v20, %v138_v17 }
 0x11c   :  { %741 = vtanh.f32 %v146_v21  ;;  %202 = vrot.lane.b32.xlu2 %v146_v21, %s815_s25 }
 0x122   :  { %v742_v22 = vpop.eup %741 }
 0x123   :  { %149 = vrot.lane.b32.xlu0 %v742_v22, %s816_s26 }
 0x176   :  { %v203_v56 = vpop.permute.xlu2 %202 }
 0x195   :  { %v150_v30 = vpop.permute.xlu0 %149 }
 0x196   :  { %v860_v31 = vmul.f32 %v150_v30, %v138_v17 }
 0x198   :  { %v159_v32 = vpack.c.bf16 %v860_v31, %v860_v31 }
 0x19a   :  { %161 = vrot.lane.b32.xlu1 %v159_v32, %s815_s25 }
 0x20c   :  { %v162_v33 = vpop.permute.xlu1 %161 }
 0x20d   :  { %706 = vmatmul.msk.bf16.vlgmr.msra.gmra.mxu1 %vm157_vm6, %v162_v33  ;;  %v39_v33 = vld [vmem:[%s990_s0 + $0x18] sm:$0xff] }
 0x20e   :  { %559 = vmatpush.bf16.msra.mxu1 %v120_v26  ;;  %699 = vmatmul.msk.f32.gmra.mxu0 %vm45_vm1, %v39_v33 }
 0x212   :  { %560 = vmatpush.bf16.msra.mxu1 %v119_v29 }
 0x28a   :  { %v175_v36 = vpop.f32.mrf.mxu1 }
 0x28b   :  { %v179_v37 = vadd.f32 %v175_v36, %v95_v35  ;;  %v100_v35 = vpop.f32.mrf.mxu0 }
 0x28c   :  { %v101_v36 = vadd.f32 %v850_v2, %v100_v35  ;;  %v41_v35 = vld [vmem:[%s990_s0 + $0x28] sm:$0xff] }
 0x28d   :  { %v707_v38 = vmul.f32 -1.442695, %v179_v37 }
 0x28f   :  { %743 = vpow2.f32 %v707_v38 }
 0x292   :  { %v177_v39 = vpop.f32.mrf.mxu1 }
 0x295   :  { %v744_v40 = vpop.eup %743 }
 0x296   :  { %v183_v41 = vadd.f32 1.0, %v744_v40 }
 0x298   :  { %745 = vrcp.f32 %v183_v41  ;;  %v195_v45 = vand.u32 2147483648, %v183_v41  ;;  %v193_v47 = vand.u32 2147483647, %v183_v41  ;;  %vm189_vm8 = vweird.f32 %v183_v41 }
 0x29a   :  { %v196_v49 = vor.u32 1.1754944e-38, %v195_v45  ;;  %vm194_vm10 = vcmp.eq.f32.partialorder %v193_v47, 8.507059e+37 }
 0x29e   :  { %v746_v42 = vpop.eup %745 }
 0x29f   :  { %v185_v43 = vmul.f32 %v746_v42, %v183_v41  ;;  %vm190_vm7 = vweird.f32 %v746_v42 }
 0x2a0   :  { %vm191_vm9 = vmor %vm189_vm8, %vm190_vm7 }
 0x2a1   :  { %v186_v44 = vsub.f32 1.0, %v185_v43 }
 0x2a3   :  { %v187_v46 = vmul.f32 %v746_v42, %v186_v44 }
 0x2a5   :  { %v188_v48 = vadd.f32 %v746_v42, %v187_v46 }
 0x2a7   :  { %v192_v50 = vsel %vm191_vm9, %v746_v42, %v188_v48 }
 0x2a8   :  { %v197_v51 = vsel %vm194_vm10, %v196_v49, %v192_v50 }
 0x2a9   :  { %v199_v52 = vmul.f32 2.0, %v197_v51  ;;  %v205_v57 = vmul.f32 %v203_v56, %v197_v51 }
 0x2ab   :  { %v708_v53 = vadd.f32 -1.0, %v199_v52 }
 0x2ad   :  { %207 = vrot.lane.b32.xlu1 %v708_v53, %s814_s24 }
 0x31f   :  { %v208_v54 = vpop.permute.xlu1 %207 }
 0x320   :  { %v210_v55 = vmul.f32 %v208_v54, %v197_v51 }
 0x322   :  { %212 = vrot.lane.b32.xlu2 %v210_v55, %s815_s25 }
 0x37c   :  { %v213_v58 = vpop.permute.xlu2 %212 }
 0x37d   :  { %v215_v59 = vadd.f32 %v213_v58, %v205_v57 }
 0x37f   :  { %747 = vtanh.f32 %v215_v59 }
 0x385   :  { %v748_v60 = vpop.eup %747 }
 0x386   :  { %218 = vrot.lane.b32.xlu0 %v748_v60, %s814_s24 }
 0x3f8   :  { %v219_v61 = vpop.permute.xlu0 %218 }
 0x3f9   :  { %v870_v62 = vmul.f32 %v219_v61, %v197_v51  ;;  %v40_v61 = vld [vmem:[%s990_s0 + $0x20] sm:$0xff] }
 0x3fa   :  { %700 = vmatmul.msk.f32.gmra.mxu0 %vm45_vm1, %v40_v61 }
 0x3fb   :  { %v228_v63 = vpack.c.bf16 %v870_v62, %v870_v62 }
 0x3fd   :  { %230 = vrot.lane.b32.xlu1 %v228_v63, %s815_s25 }
 0x402   :  { %701 = vmatmul.msk.f32.gmra.mxu0 %vm45_vm1, %v41_v35 }
 0x46f   :  { %v231_v1 = vpop.permute.xlu1 %230 }
 0x470   :  { %709 = vmatmul.msk.bf16.vlgmr.msra.gmra.mxu2 %vm157_vm6, %v231_v1 }
 0x4f3   :  { %v244_v5 = vpop.f32.mrf.mxu2 }
 0x4f4   :  { %v248_v6 = vadd.f32 %v244_v5, %v98_v4  ;;  %v103_v4 = vpop.f32.mrf.mxu0 }
 0x4f5   :  { %v104_v5 = vadd.f32 %v850_v2, %v103_v4 }
 0x4f6   :  { %v710_v7 = vmul.f32 -1.442695, %v248_v6 }
 0x4f8   :  { %749 = vpow2.f32 %v710_v7 }
 0x4fb   :  { %v246_v8 = vpop.f32.mrf.mxu2 }
 0x4fe   :  { %v750_v9 = vpop.eup %749 }
 0x4ff   :  { %v252_v10 = vadd.f32 1.0, %v750_v9 }
 0x501   :  { %751 = vrcp.f32 %v252_v10  ;;  %v264_v14 = vand.u32 2147483648, %v252_v10  ;;  %v262_v16 = vand.u32 2147483647, %v252_v10  ;;  %vm258_vm12 = vweird.f32 %v252_v10 }
 0x503   :  { %v265_v18 = vor.u32 1.1754944e-38, %v264_v14  ;;  %vm263_vm14 = vcmp.eq.f32.partialorder %v262_v16, 8.507059e+37 }
 0x507   :  { %v752_v11 = vpop.eup %751 }
 0x508   :  { %v254_v12 = vmul.f32 %v752_v11, %v252_v10  ;;  %vm259_vm11 = vweird.f32 %v752_v11 }
 0x509   :  { %vm260_vm13 = vmor %vm258_vm12, %vm259_vm11 }
 0x50a   :  { %v255_v13 = vsub.f32 1.0, %v254_v12 }
 0x50c   :  { %v256_v15 = vmul.f32 %v752_v11, %v255_v13 }
 0x50e   :  { %v257_v17 = vadd.f32 %v752_v11, %v256_v15 }
 0x510   :  { %v261_v19 = vsel %vm260_vm13, %v752_v11, %v257_v17 }
 0x511   :  { %v266_v20 = vsel %vm263_vm14, %v265_v18, %v261_v19 }
 0x512   :  { %v268_v21 = vmul.f32 2.0, %v266_v20  ;;  %v270_v25 = vmul.f32 %v266_v20, %v215_v59 }
 0x514   :  { %v711_v22 = vadd.f32 -1.0, %v268_v21 }
 0x516   :  { %272 = vrot.lane.b32.xlu2 %v711_v22, %s814_s24 }
 0x570   :  { %v273_v23 = vpop.permute.xlu2 %272 }
 0x571   :  { %v275_v24 = vmul.f32 %v273_v23, %v266_v20 }
 0x573   :  { %277 = vrot.lane.b32.xlu0 %v275_v24, %s815_s25 }
 0x5e5   :  { %v278_v26 = vpop.permute.xlu0 %277 }
 0x5e6   :  { %v280_v27 = vadd.f32 %v278_v26, %v270_v25 }
 0x5e8   :  { %753 = vtanh.f32 %v280_v27 }
 0x5ee   :  { %v754_v28 = vpop.eup %753 }
 0x5ef   :  { %283 = vrot.lane.b32.xlu1 %v754_v28, %s814_s24 }
 0x661   :  { %v284_v29 = vpop.permute.xlu1 %283 }
 0x662   :  { %v884_v30 = vmul.f32 %v284_v29, %v266_v20 }
 0x664   :  { %v293_v32 = vpack.c.bf16 %v884_v30, %v884_v30 }
 0x666   :  { %295 = vrot.lane.b32.xlu2 %v293_v32, %s815_s25 }
 0x6c0   :  { %v296_v34 = vpop.permute.xlu2 %295 }
 0x6c1   :  { %712 = vmatmul.msk.bf16.vlgmr.msra.gmra.mxu3 %vm157_vm6, %v296_v34 }
 0x744   :  { %v309_v37 = vpop.f32.mrf.mxu3 }
 0x745   :  { %v313_v38 = vadd.f32 %v309_v37, %v101_v36  ;;  %v106_v37 = vpop.f32.mrf.mxu0 }
 0x747   :  { %v713_v39 = vmul.f32 -1.442695, %v313_v38  ;;  %v107_v38 = vadd.f32 %v850_v2, %v106_v37 }
 0x749   :  { %755 = vpow2.f32 %v713_v39 }
 0x74c   :  { %v311_v40 = vpop.f32.mrf.mxu3 }
 0x74f   :  { %v756_v41 = vpop.eup %755 }
 0x750   :  { %v317_v42 = vadd.f32 1.0, %v756_v41 }
 0x752   :  { %757 = vrcp.f32 %v317_v42  ;;  %v329_v46 = vand.u32 2147483648, %v317_v42  ;;  %v327_v48 = vand.u32 2147483647, %v317_v42  ;;  %vm323_vm0 = vweird.f32 %v317_v42 }
 0x754   :  { %v330_v50 = vor.u32 1.1754944e-38, %v329_v46  ;;  %vm328_vm3 = vcmp.eq.f32.partialorder %v327_v48, 8.507059e+37 }
 0x758   :  { %v758_v43 = vpop.eup %757 }
 0x759   :  { %v319_v44 = vmul.f32 %v758_v43, %v317_v42  ;;  %vm324_vm15 = vweird.f32 %v758_v43 }
 0x75a   :  { %vm325_vm2 = vmor %vm323_vm0, %vm324_vm15 }
 0x75b   :  { %v320_v45 = vsub.f32 1.0, %v319_v44 }
 0x75d   :  { %v321_v47 = vmul.f32 %v758_v43, %v320_v45 }
 0x75f   :  { %v322_v49 = vadd.f32 %v758_v43, %v321_v47 }
 0x761   :  { %v326_v51 = vsel %vm325_vm2, %v758_v43, %v322_v49 }
 0x762   :  { %v331_v52 = vsel %vm328_vm3, %v330_v50, %v326_v51 }
 0x763   :  { %v333_v53 = vmul.f32 2.0, %v331_v52  ;;  %v335_v57 = vmul.f32 %v331_v52, %v280_v27 }
 0x765   :  { %v714_v54 = vadd.f32 -1.0, %v333_v53 }
 0x767   :  { %337 = vrot.lane.b32.xlu0 %v714_v54, %s814_s24 }
 0x7d9   :  { %v338_v55 = vpop.permute.xlu0 %337 }
 0x7da   :  { %v340_v56 = vmul.f32 %v338_v55, %v331_v52 }
 0x7dc   :  { %342 = vrot.lane.b32.xlu1 %v340_v56, %s815_s25 }
 0x84e   :  { %v343_v58 = vpop.permute.xlu1 %342 }
 0x84f   :  { %v345_v59 = vadd.f32 %v343_v58, %v335_v57 }
 0x851   :  { %759 = vtanh.f32 %v345_v59 }
 0x857   :  { %v760_v60 = vpop.eup %759 }
 0x858   :  { %348 = vrot.lane.b32.xlu2 %v760_v60, %s814_s24 }
 0x8b2   :  { %v349_v63 = vpop.permute.xlu2 %348 }
 0x8b3   :  { %v902_v0 = vmul.f32 %v349_v63, %v331_v52 }
 0x8b5   :  { %v354_v1 = vpack.c.bf16 %v902_v0, %v902_v0 }
 0x8b7   :  { %356 = vrot.lane.b32.xlu0 %v354_v1, %s815_s25 }
 0x929   :  { %v357_v3 = vpop.permute.xlu0 %356 }
 0x92a   :  { %715 = vmatmul.msk.bf16.vlgmr.msrb.gmra.mxu1 %vm157_vm6, %v357_v3 }
 0x9a7   :  { %v370_v6 = vpop.f32.mrf.mxu1 }
 0x9a8   :  { %v374_v7 = vadd.f32 %v370_v6, %v104_v5  ;;  %v42_v5 = vld [vmem:[%s990_s0 + $0x30] sm:$0xff] }
 0x9a9   :  { %702 = vmatmul.msk.f32.gmra.mxu0 %vm45_vm1, %v42_v5  ;;  %v616_v5 = vld [vmem:[#allocation3 + $0x70] sm:$0xff] }
 0x9aa   :  { %v716_v8 = vmul.f32 -1.442695, %v374_v7 }
 0x9ac   :  { %761 = vpow2.f32 %v716_v8 }
 0x9af   :  { %v372_v9 = vpop.f32.mrf.mxu1 }
 0x9b2   :  { %v762_v10 = vpop.eup %761 }
 0x9b3   :  { %v378_v11 = vadd.f32 1.0, %v762_v10 }
 0x9b5   :  { %763 = vrcp.f32 %v378_v11  ;;  %v390_v15 = vand.u32 2147483648, %v378_v11  ;;  %v388_v17 = vand.u32 2147483647, %v378_v11  ;;  %vm384_vm5 = vweird.f32 %v378_v11 }
 0x9b7   :  { %v391_v19 = vor.u32 1.1754944e-38, %v390_v15  ;;  %vm389_vm8 = vcmp.eq.f32.partialorder %v388_v17, 8.507059e+37 }
 0x9bb   :  { %v764_v12 = vpop.eup %763 }
 0x9bc   :  { %v380_v13 = vmul.f32 %v764_v12, %v378_v11  ;;  %vm385_vm4 = vweird.f32 %v764_v12 }
 0x9bd   :  { %vm386_vm7 = vmor %vm384_vm5, %vm385_vm4  ;;  %vm226_vm4 = vcmask 523520   ;;  %vm291_vm5 = vcmask 785920  }
 0x9be   :  { %v381_v14 = vsub.f32 1.0, %v380_v13 }
 0x9c0   :  { %v382_v16 = vmul.f32 %v764_v12, %v381_v14 }
 0x9c2   :  { %v383_v18 = vadd.f32 %v764_v12, %v382_v16 }
 0x9c4   :  { %v387_v20 = vsel %vm386_vm7, %v764_v12, %v383_v18  ;;  %vm352_vm7 = vcmask 1048320  }
 0x9c5   :  { %v392_v21 = vsel %vm389_vm8, %v391_v19, %v387_v20  ;;  %vm688_vm8 = vcmask 3072  }
 0x9c6   :  { %v394_v22 = vmul.f32 2.0, %v392_v21  ;;  %v396_v26 = vmul.f32 %v392_v21, %v345_v59 }
 0x9c8   :  { %v717_v23 = vadd.f32 -1.0, %v394_v22 }
 0x9ca   :  { %398 = vrot.lane.b32.xlu1 %v717_v23, %s814_s24 }
 0xa26   :  { %v109_v7 = vpop.f32.mrf.mxu0 }
 0xa27   :  { %v110_v8 = vadd.f32 %v850_v2, %v109_v7 }
 0xa3c   :  { %v399_v24 = vpop.permute.xlu1 %398 }
 0xa3d   :  { %v401_v25 = vmul.f32 %v399_v24, %v392_v21 }
 0xa3f   :  { %403 = vrot.lane.b32.xlu2 %v401_v25, %s815_s25 }
 0xa99   :  { %v404_v27 = vpop.permute.xlu2 %403 }
 0xa9a   :  { %v406_v28 = vadd.f32 %v404_v27, %v396_v26 }
 0xa9c   :  { %765 = vtanh.f32 %v406_v28 }
 0xaa2   :  { %v766_v29 = vpop.eup %765 }
 0xaa3   :  { %409 = vrot.lane.b32.xlu0 %v766_v29, %s814_s24 }
 0xb15   :  { %v410_v32 = vpop.permute.xlu0 %409 }
 0xb16   :  { %v912_v33 = vmul.f32 %v410_v32, %v392_v21 }
 0xb18   :  { %v418_v34 = vpack.c.bf16 %v912_v33, %v912_v33 }
 0xb1a   :  { %420 = vrot.lane.b32.xlu1 %v418_v34, %s815_s25 }
 0xb8c   :  { %v421_v36 = vpop.permute.xlu1 %420 }
 0xb8d   :  { %718 = vmatmul.msk.bf16.vlgmr.msrb.gmra.mxu2 %vm157_vm6, %v421_v36  ;;  %v43_v36 = vld [vmem:[%s990_s0 + $0x38] sm:$0xff] }
 0xb8e   :  { %703 = vmatmul.msk.f32.gmra.mxu0 %vm45_vm1, %v43_v36 }
 0xc10   :  { %v434_v39 = vpop.f32.mrf.mxu2 }
 0xc11   :  { %v438_v40 = vadd.f32 %v434_v39, %v107_v38 }
 0xc13   :  { %v719_v41 = vmul.f32 -1.442695, %v438_v40 }
 0xc15   :  { %767 = vpow2.f32 %v719_v41 }
 0xc18   :  { %v436_v42 = vpop.f32.mrf.mxu2 }
 0xc1b   :  { %v768_v43 = vpop.eup %767 }
 0xc1c   :  { %v442_v44 = vadd.f32 1.0, %v768_v43  ;;  %v112_v43 = vpop.f32.mrf.mxu0 }
 0xc1e   :  { %769 = vrcp.f32 %v442_v44  ;;  %v454_v48 = vand.u32 2147483648, %v442_v44  ;;  %v452_v50 = vand.u32 2147483647, %v442_v44  ;;  %vm448_vm10 = vweird.f32 %v442_v44 }
 0xc20   :  { %v455_v52 = vor.u32 1.1754944e-38, %v454_v48  ;;  %vm453_vm12 = vcmp.eq.f32.partialorder %v452_v50, 8.507059e+37 }
 0xc24   :  { %v770_v45 = vpop.eup %769 }
 0xc25   :  { %v444_v46 = vmul.f32 %v770_v45, %v442_v44  ;;  %vm449_vm9 = vweird.f32 %v770_v45  ;;  %v113_v44 = vadd.f32 %v850_v2, %v112_v43 }
 0xc26   :  { %vm450_vm11 = vmor %vm448_vm10, %vm449_vm9 }
 0xc27   :  { %v445_v47 = vsub.f32 1.0, %v444_v46 }
 0xc29   :  { %v446_v49 = vmul.f32 %v770_v45, %v445_v47 }
 0xc2b   :  { %v447_v51 = vadd.f32 %v770_v45, %v446_v49 }
 0xc2d   :  { %v451_v53 = vsel %vm450_vm11, %v770_v45, %v447_v51 }
 0xc2e   :  { %v456_v54 = vsel %vm453_vm12, %v455_v52, %v451_v53 }
 0xc2f   :  { %v458_v55 = vmul.f32 2.0, %v456_v54  ;;  %v460_v59 = vmul.f32 %v456_v54, %v406_v28 }
 0xc31   :  { %v720_v56 = vadd.f32 -1.0, %v458_v55 }
 0xc33   :  { %462 = vrot.lane.b32.xlu2 %v720_v56, %s814_s24 }
 0xc8d   :  { %v463_v57 = vpop.permute.xlu2 %462 }
 0xc8e   :  { %v465_v58 = vmul.f32 %v463_v57, %v456_v54 }
 0xc90   :  { %467 = vrot.lane.b32.xlu0 %v465_v58, %s815_s25 }
 0xd02   :  { %v468_v60 = vpop.permute.xlu0 %467 }
 0xd03   :  { %v470_v61 = vadd.f32 %v468_v60, %v460_v59  ;;  %v621_v60 = vld [vmem:[#allocation3 + $0x98] sm:$0xff] }
 0xd04   :  { %641 = vmatpush.msra.mxu2 %v621_v60 }
 0xd05   :  { %771 = vtanh.f32 %v470_v61 }
 0xd0b   :  { %v772_v63 = vpop.eup %771 }
 0xd0c   :  { %473 = vrot.lane.b32.xlu1 %v772_v63, %s814_s24  ;;  %v619_v63 = vld [vmem:[#allocation3 + $0x88] sm:$0xff] }
 0xd7e   :  { %v474_v1 = vpop.permute.xlu1 %473 }
 0xd7f   :  { %v926_v3 = vmul.f32 %v474_v1, %v456_v54  ;;  %v618_v1 = vld [vmem:[#allocation3 + $0x80] sm:$0xff] }
 0xd81   :  { %v482_v4 = vpack.c.bf16 %v926_v3, %v926_v3 }
 0xd83   :  { %484 = vrot.lane.b32.xlu2 %v482_v4, %s815_s25  ;;  %v617_v4 = vld [vmem:[#allocation3 + $0x78] sm:$0xff] }
 0xddd   :  { %v485_v6 = vpop.permute.xlu2 %484 }
 0xdde   :  { %721 = vmatmul.msk.bf16.vlgmr.msrb.gmra.mxu3 %vm157_vm6, %v485_v6  ;;  %v615_v6 = vld [vmem:[#allocation3 + $0x68] sm:$0xff] }
 0xe61   :  { %v498_v9 = vpop.f32.mrf.mxu3 }
 0xe62   :  { %v502_v10 = vadd.f32 %v498_v9, %v110_v8 }
 0xe64   :  { %v722_v11 = vmul.f32 -1.442695, %v502_v10  ;;  %v614_v10 = vld [vmem:[#allocation3 + $0x60] sm:$0xff] }
 0xe66   :  { %773 = vpow2.f32 %v722_v11  ;;  %v613_v11 = vld [vmem:[#allocation3 + $0x58] sm:$0xff] }
 0xe69   :  { %v500_v12 = vpop.f32.mrf.mxu3 }
 0xe6a   :  { %v612_v12 = vld [vmem:[#allocation3 + $0x50] sm:$0xff] }
 0xe6c   :  { %v774_v13 = vpop.eup %773 }
 0xe6d   :  { %v506_v14 = vadd.f32 1.0, %v774_v13  ;;  %v611_v13 = vld [vmem:[#allocation3 + $0x48] sm:$0xff] }
 0xe6f   :  { %775 = vrcp.f32 %v506_v14  ;;  %v518_v18 = vand.u32 2147483648, %v506_v14  ;;  %v516_v20 = vand.u32 2147483647, %v506_v14  ;;  %vm512_vm14 = vweird.f32 %v506_v14 }
 0xe71   :  { %v519_v22 = vor.u32 1.1754944e-38, %v518_v18  ;;  %vm517_vm0 = vcmp.eq.f32.partialorder %v516_v20, 8.507059e+37  ;;  %v637_v18 = vld [vmem:[#allocation3 + $0x118] sm:$0xff]  ;;  %v635_v20 = vld [vmem:[#allocation3 + $0x108] sm:$0xff] }
 0xe72   :  { %661 = vmatpush.msra.mxu3 %v637_v18 }
 0xe75   :  { %v776_v15 = vpop.eup %775 }
 0xe76   :  { %v508_v16 = vmul.f32 %v776_v15, %v506_v14  ;;  %vm513_vm13 = vweird.f32 %v776_v15  ;;  %v610_v14 = vld [vmem:[#allocation3 + $0x40] sm:$0xff] }
 0xe77   :  { %vm514_vm15 = vmor %vm512_vm14, %vm513_vm13 }
 0xe78   :  { %v509_v17 = vsub.f32 1.0, %v508_v16  ;;  %v608_v16 = vld [vmem:[#allocation3 + $0x30] sm:$0xff] }
 0xe7a   :  { %v510_v19 = vmul.f32 %v776_v15, %v509_v17  ;;  %v606_v17 = vld [vmem:[#allocation3 + $0x20] sm:$0xff] }
 0xe7c   :  { %v511_v21 = vadd.f32 %v776_v15, %v510_v19  ;;  %v636_v19 = vld [vmem:[#allocation3 + $0x110] sm:$0xff] }
 0xe7d   :  { %662 = vmatpush.msra.mxu3 %v636_v19 }
 0xe7e   :  { %v515_v23 = vsel %vm514_vm15, %v776_v15, %v511_v21  ;;  %v609_v15 = vld [vmem:[#allocation3 + $0x38] sm:$0xff]  ;;  %v634_v21 = vld [vmem:[#allocation3 + $0x100] sm:$0xff] }
 0xe7f   :  { %v520_v24 = vsel %vm517_vm0, %v519_v22, %v515_v23  ;;  %663 = vmatpush.msra.mxu3 %v635_v20  ;;  %v633_v22 = vld [vmem:[#allocation3 + $0xf8] sm:$0xff]  ;;  %v632_v23 = vld [vmem:[#allocation3 + $0xf0] sm:$0xff] }
 0xe80   :  { %v522_v25 = vmul.f32 2.0, %v520_v24  ;;  %v524_v29 = vmul.f32 %v520_v24, %v470_v61  ;;  %v620_v61 = vld [vmem:[#allocation3 + $0x90] sm:$0xff] }
 0xe81   :  { %642 = vmatpush.msra.mxu2 %v620_v61  ;;  %664 = vmatpush.msra.mxu3 %v634_v21 }
 0xe82   :  { %v723_v26 = vadd.f32 -1.0, %v522_v25  ;;  %v630_v25 = vld [vmem:[#allocation3 + $0xe0] sm:$0xff] }
 0xe83   :  { %643 = vmatpush.msra.mxu2 %v619_v63  ;;  %665 = vmatpush.msra.mxu3 %v633_v22 }
 0xe84   :  { %526 = vrot.lane.b32.xlu0 %v723_v26, %s814_s24 }
 0xe85   :  { %644 = vmatpush.msra.mxu2 %v618_v1  ;;  %666 = vmatpush.msra.mxu3 %v632_v23 }
 0xe87   :  { %645 = vmatpush.msra.mxu2 %v617_v4 }
 0xe89   :  { %646 = vmatpush.msra.mxu2 %v616_v5 }
 0xe8b   :  { %647 = vmatpush.msra.mxu2 %v615_v6 }
 0xe8d   :  { %648 = vmatpush.msra.mxu2 %v614_v10 }
 0xe8f   :  { %649 = vmatpush.msra.mxu2 %v613_v11 }
 0xe91   :  { %650 = vmatpush.msra.mxu2 %v612_v12 }
 0xe93   :  { %651 = vmatpush.msra.mxu2 %v611_v13 }
 0xe95   :  { %652 = vmatpush.msra.mxu2 %v610_v14 }
 0xe97   :  { %653 = vmatpush.msra.mxu2 %v609_v15 }
 0xe99   :  { %654 = vmatpush.msra.mxu2 %v608_v16 }
 0xef6   :  { %v527_v27 = vpop.permute.xlu0 %526 }
 0xef7   :  { %v529_v28 = vmul.f32 %v527_v27, %v520_v24 }
 0xef9   :  { %531 = vrot.lane.b32.xlu1 %v529_v28, %s815_s25  ;;  %v629_v28 = vld [vmem:[#allocation3 + $0xd8] sm:$0xff] }
 0xf6b   :  { %v532_v32 = vpop.permute.xlu1 %531 }
 0xf6c   :  { %v939_v34 = vadd.f32 %v532_v32, %v524_v29  ;;  %v628_v32 = vld [vmem:[#allocation3 + $0xd0] sm:$0xff] }
 0xf6e   :  { %777 = vtanh.f32 %v939_v34 }
 0xf74   :  { %v778_v35 = vpop.eup %777 }
 0xf75   :  { %537 = vrot.lane.b32.xlu2 %v778_v35, %s814_s24  ;;  %v627_v35 = vld [vmem:[#allocation3 + $0xc8] sm:$0xff] }
 0xfcf   :  { %v538_v37 = vpop.permute.xlu2 %537 }
 0xfd0   :  { %v540_v38 = vmul.f32 %v538_v37, %v520_v24  ;;  %v631_v24 = vld [vmem:[#allocation3 + $0xe8] sm:$0xff] }
 0xfd1   :  { %667 = vmatpush.msra.mxu3 %v631_v24 }
 0xfd2   :  { %v546_v39 = vpack.c.bf16 %v540_v38, %v540_v38 }
 0xfd3   :  { %668 = vmatpush.msra.mxu3 %v630_v25 }
 0xfd4   :  { %548 = vrot.lane.b32.xlu0 %v546_v39, %s815_s25  ;;  %v625_v39 = vld [vmem:[#allocation3 + $0xb8] sm:$0xff] }
 0xfd5   :  { %669 = vmatpush.msra.mxu3 %v629_v28 }
 0xfd7   :  { %670 = vmatpush.msra.mxu3 %v628_v32 }
 0xfd9   :  { %671 = vmatpush.msra.mxu3 %v627_v35 }
 0xfdc   :  { %154 = vrot.lane.b32.xlu0 %v860_v31, %s815_s25 }
 0xfe4   :  { %414 = vrot.lane.b32.xlu0 %v912_v33, %s815_s25 }
 0xfec   :  { %542 = vrot.lane.b32.xlu0 %v540_v38, %s816_s26  ;;  %v626_v38 = vld [vmem:[#allocation3 + $0xc0] sm:$0xff] }
 0xfed   :  { %672 = vmatpush.msra.mxu3 %v626_v38 }
 0xfef   :  { %673 = vmatpush.msra.mxu3 %v625_v39 }
0x1046   :  { %v549_v40 = vpop.permute.xlu0 %548 }
0x1047   :  { %724 = vmatmul.msk.bf16.vlgmr.msra.gmra.mxu1 %vm157_vm6, %v549_v40  ;;  %v624_v40 = vld [vmem:[#allocation3 + $0xb0] sm:$0xff] }
0x1048   :  { %674 = vmatpush.msra.mxu3 %v624_v40 }
0x104e   :  { %v155_v41 = vpop.permute.xlu0 %154 }
0x104f   :  { %158 = vst.msk [vmem:[#allocation2] sm:$0xff] %vm157_vm6, %v155_v41  ;;  %v623_v41 = vld [vmem:[#allocation3 + $0xa8] sm:$0xff] }
0x1050   :  { %675 = vmatpush.msra.mxu3 %v623_v41 }
0x1056   :  { %v415_v42 = vpop.permute.xlu0 %414 }
0x1057   :  { %417 = vst.msk [vmem:[#allocation2 + $0x8] sm:$0xff] %vm157_vm6, %v415_v42  ;;  %v622_v42 = vld [vmem:[#allocation3 + $0xa0] sm:$0xff] }
0x1058   :  { %676 = vmatpush.msra.mxu3 %v622_v42 }
0x105e   :  { %v543_v9 = vpop.permute.xlu0 %542 }
0x10c4   :  { %v562_v45 = vpop.f32.mrf.mxu1 }
0x10c5   :  { %v566_v46 = vadd.f32 %v562_v45, %v113_v44  ;;  %v734_v45 = vld [vmem:[%s991_s1 + $0x5] ss:$0 sm:$0xff] }
0x10c7   :  { %v725_v31 = vmul.f32 -1.442695, %v566_v46 }
0x10c9   :  { %779 = vpow2.f32 %v725_v31 }
0x10cc   :  { %v564_v47 = vpop.f32.mrf.mxu1 }
0x10cf   :  { %v780_v33 = vpop.eup %779 }
0x10d0   :  { %v570_v48 = vadd.f32 1.0, %v780_v33 }
0x10d2   :  { %781 = vrcp.f32 %v570_v48  ;;  %v582_v52 = vand.u32 2147483648, %v570_v48  ;;  %v580_v54 = vand.u32 2147483647, %v570_v48  ;;  %vm576_vm6 = vweird.f32 %v570_v48 }
0x10d4   :  { %v583_v56 = vor.u32 1.1754944e-38, %v582_v52  ;;  %vm581_vm3 = vcmp.eq.f32.partialorder %v580_v54, 8.507059e+37 }
0x10d8   :  { %v782_v49 = vpop.eup %781 }
0x10d9   :  { %v572_v50 = vmul.f32 %v782_v49, %v570_v48  ;;  %vm577_vm1 = vweird.f32 %v782_v49  ;;  %v735_v48 = vld [vmem:[%s991_s1 + $0x6] ss:$0 sm:$0xff] }
0x10da   :  { %vm578_vm2 = vmor %vm576_vm6, %vm577_vm1 }
0x10db   :  { %v573_v51 = vsub.f32 1.0, %v572_v50 }
0x10dd   :  { %v574_v53 = vmul.f32 %v782_v49, %v573_v51  ;;  %v736_v51 = vld [vmem:[%s991_s1 + $0x7] ss:$0 sm:$0xff] }
0x10df   :  { %v575_v55 = vadd.f32 %v782_v49, %v574_v53 }
0x10e1   :  { %v579_v2 = vsel %vm578_vm2, %v782_v49, %v575_v55 }
0x10e2   :  { %v957_v57 = vsel %vm581_vm3, %v583_v56, %v579_v2 }
0x10e3   :  { %v586_v58 = vmul.f32 2.0, %v957_v57  ;;  %v588_v26 = vmul.f32 %v957_v57, %v939_v34 }
0x10e5   :  { %v726_v59 = vadd.f32 -1.0, %v586_v58 }
0x10e7   :  { %590 = vrot.lane.b32.xlu1 %v726_v59, %s814_s24 }
0x10ef   :  { %223 = vrot.lane.b32.xlu1 %v870_v62, %s814_s24 }
0x10f7   :  { %478 = vrot.lane.b32.xlu1 %v926_v3, %s814_s24 }
0x1159   :  { %v591_v7 = vpop.permute.xlu1 %590 }
0x115a   :  { %v593_v62 = vmul.f32 %v591_v7, %v957_v57 }
0x115c   :  { %595 = vrot.lane.b32.xlu2 %v593_v62, %s815_s25 }
0x1161   :  { %v224_v3 = vpop.permute.xlu1 %223 }
0x1162   :  { %227 = vst.msk [vmem:[#allocation2] sm:$0xff] %vm226_vm4, %v224_v3 }
0x1164   :  { %288 = vrot.lane.b32.xlu2 %v884_v30, %s816_s26  ;;  %v607_v30 = vld [vmem:[#allocation3 + $0x28] sm:$0xff] }
0x1165   :  { %655 = vmatpush.msra.mxu2 %v607_v30 }
0x1167   :  { %656 = vmatpush.msra.mxu2 %v606_v17 }
0x1169   :  { %v479_v8 = vpop.permute.xlu1 %478 }
0x116a   :  { %481 = vst.msk [vmem:[#allocation2 + $0x8] sm:$0xff] %vm226_vm4, %v479_v8 }
0x116b   :  { %545 = vst.msk [vmem:[#allocation2 + $0x8] sm:$0xff] %vm291_vm5, %v543_v9 }
0x11b6   :  { %v596_v27 = vpop.permute.xlu2 %595 }
0x11b7   :  { %v598_v29 = vadd.f32 %v596_v27, %v588_v26 }
0x11b9   :  { %783 = vtanh.f32 %v598_v29 }
0x11be   :  { %v289_v36 = vpop.permute.xlu2 %288 }
0x11bf   :  { %v784_v37 = vpop.eup %783  ;;  %292 = vst.msk [vmem:[#allocation2] sm:$0xff] %vm291_vm5, %v289_v36 }
0x11c0   :  { %353 = vst.msk [vmem:[#allocation2] sm:$0xff] %vm352_vm7, %v902_v0  ;;  %601 = vrot.lane.b32.xlu2 %v784_v37, %s814_s24 }
0x11c7   :  { %v638_v34 = vld [vmem:[#allocation2] sm:$0xff] }
0x11c8   :  { %657 = vmatmul.f32.vlgmr.msra.gmra.mxu2 %v638_v34 }
0x121a   :  { %v602_v43 = vpop.permute.xlu2 %601 }
0x121b   :  { %v604_v44 = vmul.f32 %v602_v43, %v957_v57 }
0x121d   :  { %605 = vst.msk [vmem:[#allocation2 + $0x8] sm:$0xff] %vm352_vm7, %v604_v44 }
0x1224   :  { %v639_v0 = vld [vmem:[#allocation2 + $0x8] sm:$0xff] }
0x1225   :  { %677 = vmatmul.f32.vlgmr.msra.gmra.mxu3 %v639_v0 }
0x124b   :  { %v658_v46 = vpop.f32.mrf.mxu2 }
0x124c   :  { %v659_v31 = vadd.f32 %v734_v45, %v658_v46 }
0x12a8   :  { %v678_v47 = vpop.f32.mrf.mxu3 }
0x12a9   :  { %v679_v33 = vadd.f32 %v678_v47, %v659_v31 }
0x12ab   :  { %v681_v49 = vmax.f32 %v679_v33, 0.0 }
0x12ad   :  { %v683_v50 = vmul.f32 %v735_v48, %v681_v49 }
0x12af   :  { %684 = vadd.xlane.f32.xlu1 %v683_v50 }
0x1322   :  { %v685_v52 = vpop.xlane.xlu1 %684 }
0x1323   :  { %v687_v53 = vadd.f32 %v736_v51, %v685_v52 }
0x1325   :  { %689 = vst.msk [vmem:[%s993_s3] sm:$0xf] %vm688_vm8, %v687_v53 }
0x1326   :  { %694 = vsyncpa [#allocation4], 1 }

</bundles_post_ra>
